<compile_context>
chip_gen: v6e
topology: v6e:2x2x1
jax: 0.10.0
libtpu: 0.0.40
codegen_flags: <defaults>
</compile_context>

<pallas_src>
import jax
import jax.numpy as jnp
from jax.experimental import pallas as pl
from jax.experimental.pallas import tpu as pltpu


def _round_up(n, m):
    return ((n + m - 1) // m) * m


def qnetwork_kernel(x_ref,
                    w1_ref, b1_ref,
                    w2_ref, b2_ref,
                    w3_ref, b3_ref,
                    wq_ref, bq_ref,
                    q_ref):
    """One batch tile of the dueling forward, fully in VMEM.

    All matmuls are bf16 x bf16 on the MXU with f32 accumulation.  The
    dueling combine is pre-folded into (wq, bq) in the wrapper, so the last
    matmul directly produces q.  Padding columns are zero and value-preserving
    through ReLU; they are sliced off outside the kernel.
    """
    x = x_ref[...]                                                    # [TB, D] bf16

    h = jnp.dot(x, w1_ref[...], preferred_element_type=jnp.float32)
    h = jnp.maximum(h + b1_ref[...], 0.0)                             # [TB, Hp] f32

    h = jnp.dot(h.astype(jnp.bfloat16), w2_ref[...],
                preferred_element_type=jnp.float32)
    h = jnp.maximum(h + b2_ref[...], 0.0)                             # [TB, Hp] f32

    h = jnp.dot(h.astype(jnp.bfloat16), w3_ref[...],
                preferred_element_type=jnp.float32)
    h = jnp.maximum(h + b3_ref[...], 0.0)                             # [TB, Hp] f32

    q = jnp.dot(h.astype(jnp.bfloat16), wq_ref[...],
                preferred_element_type=jnp.float32) + bq_ref[...]     # [TB, Np] f32

    q_ref[...] = q.astype(q_ref.dtype)                                # lane-dense store


def qnetwork_forward(x, params, *, block_b=1024):
    """x: [B, C, H, W] (NCHW, like the PyTorch module). Returns q: [B, output_dim]."""
    (w1, b1, w2, b2, w3, b3, wa, ba, wv, bv) = params

    B = x.shape[0]
    x_flat = x.reshape(B, -1).astype(jnp.bfloat16)            # x.view(x.size(0), -1), bf16 stream
    D = x_flat.shape[1]
    H = w1.shape[1]
    A = wa.shape[1]

    # ---- one-time parameter prep (wrapper side, f32 math) ------------------
    # Fold the dueling combine into a single [H, A] head:
    #   q = val + adv - mean(adv)  =>  Wq = wa - mean_cols(wa) + wv,  bq likewise.
    wq = wa - jnp.mean(wa, axis=1, keepdims=True) + wv        # [H, A]  (wv broadcasts)
    bq = ba - jnp.mean(ba, axis=1, keepdims=True) + bv        # [1, A]

    # Pad to lane-dense widths (multiples of 128); zero padding is exact.
    # NOTE: on v6e/v7x with a real hidden >= 256 and an MXU-bound kernel,
    # rounding Hp to 256 fills the 256x256 MXU better; 128 is right for the
    # small demo and for v5e.
    Hp = _round_up(H, 128)
    Np = _round_up(A, 128)

    def pad2(a, rows, cols):
        return jnp.pad(a, ((0, rows - a.shape[0]), (0, cols - a.shape[1])))

    # Weights bf16 (native MXU dtype + half the HBM->VMEM traffic); biases f32.
    w1p = pad2(w1, D, Hp).astype(jnp.bfloat16)
    w2p = pad2(w2, Hp, Hp).astype(jnp.bfloat16)
    w3p = pad2(w3, Hp, Hp).astype(jnp.bfloat16)
    wqp = pad2(wq, Hp, Np).astype(jnp.bfloat16)
    b1p = pad2(b1, 1, Hp).astype(jnp.float32)
    b2p = pad2(b2, 1, Hp).astype(jnp.float32)
    b3p = pad2(b3, 1, Hp).astype(jnp.float32)
    bqp = pad2(bq, 1, Np).astype(jnp.float32)

    # ---- batch tiling -------------------------------------------------------
    # block_b=1024: bf16 x double-buffer (2*TB*D*2 B) + f32 q double-buffer +
    # bf16 weights stay well under v7x's 64 MiB VMEM at typical D, while the
    # per-grid-step overhead (~0.35 us) is amortized.  Reduce block_b if D is
    # very large; multiple tiles let "parallel" shard across v7x's 2 TCs.
    TB = _round_up(min(block_b, max(B, 1)), 8)                # tile rows (multiple of 8)
    Bp = _round_up(B, TB)
    xp = jnp.pad(x_flat, ((0, Bp - B), (0, 0)))               # padded rows are zeros
    grid = (Bp // TB,)

    const = lambda i: (0, 0)                                  # weights stay VMEM-resident
    in_specs = [
        pl.BlockSpec((TB, D), lambda i: (i, 0)),              # x tile (pipelined)
        pl.BlockSpec((D, Hp), const), pl.BlockSpec((1, Hp), const),
        pl.BlockSpec((Hp, Hp), const), pl.BlockSpec((1, Hp), const),
        pl.BlockSpec((Hp, Hp), const), pl.BlockSpec((1, Hp), const),
        pl.BlockSpec((Hp, Np), const), pl.BlockSpec((1, Np), const),
    ]
    out_specs = pl.BlockSpec((TB, Np), lambda i: (i, 0))

    weight_bytes = 2 * (D * Hp + 2 * Hp * Hp + Hp * Np) + 4 * (3 * Hp + Np)
    cost = pl.CostEstimate(
        flops=2 * Bp * (D * Hp + 2 * Hp * Hp + Hp * Np),
        transcendentals=0,
        bytes_accessed=Bp * D * 2 + Bp * Np * 4 + weight_bytes,   # bf16 x in, f32 q out
    )

    q_full = pl.pallas_call(
        qnetwork_kernel,
        out_shape=jax.ShapeDtypeStruct((Bp, Np), jnp.float32),
        grid=grid,
        in_specs=in_specs,
        out_specs=out_specs,
        compiler_params=pltpu.CompilerParams(
            dimension_semantics=("parallel",),             # batch tiles across TCs
            vmem_limit_bytes=48 * 1024 * 1024,             # <= v7x 64 MiB, ample headroom
        ),
        cost_estimate=cost,
    )(xp, w1p, b1p, w2p, b2p, w3p, b3p, wqp, bqp)

    return q_full[:B, :A]


def init_params(key, input_dim, output_dim, hidden):
    """Deterministic synthetic params. Weights stored as [in, out]."""
    def linear(k, fan_in, fan_out):
        kw, kb = jax.random.split(k)
        bound = 1.0 / jnp.sqrt(jnp.float32(fan_in))       # matches nn.Linear init range
        w = jax.random.uniform(kw, (fan_in, fan_out), jnp.float32, -bound, bound)
        b = jax.random.uniform(kb, (1, fan_out), jnp.float32, -bound, bound)
        return w, b

    k1, k2, k3, k4, k5, _k6 = jax.random.split(key, 6)
    w1, b1 = linear(k1, input_dim, hidden)
    w2, b2 = linear(k2, hidden, hidden)
    w3, b3 = linear(k3, hidden, hidden)
    wa, ba = linear(k4, hidden, output_dim)   # advantage head
    wv, bv = linear(k5, hidden, 1)            # value head
    # TODO(synk): self.out in the PyTorch module is unused in forward(); not materialized.
    return (w1, b1, w2, b2, w3, b3, wa, ba, wv, bv)


if __name__ == "__main__":
    B, C, H, W = 2, 4, 16, 16
    input_dim = C * H * W          # 1024 flattened per-sample features
    output_dim = 8                 # number of actions
    hidden = 32                    # small hidden size for the demo (padded to 128 inside)

    key = jax.random.PRNGKey(0)
    kx, kp = jax.random.split(key)
    x = jax.random.normal(kx, (B, C, H, W), jnp.float32)
    params = init_params(kp, input_dim, output_dim, hidden)

    q = qnetwork_forward(x, params)
    q = jax.block_until_ready(q)

    # Pure-JAX reference of the dueling forward using the same bf16 inputs on
    # the MXU (bf16 x / weights / inter-layer activations, f32 accumulation).
    # The kernel additionally quantizes the *folded* head weights to bf16, so
    # the tolerance is set to cover that ordering difference.
    (w1, b1, w2, b2, w3, b3, wa, ba, wv, bv) = params
    bf = lambda a: a.astype(jnp.bfloat16)
    f32 = jnp.float32
    xf = bf(x.reshape(B, -1))
    h = jnp.maximum(jnp.dot(xf, bf(w1), preferred_element_type=f32) + b1, 0.0)
    h = jnp.maximum(jnp.dot(bf(h), bf(w2), preferred_element_type=f32) + b2, 0.0)
    h = jnp.maximum(jnp.dot(bf(h), bf(w3), preferred_element_type=f32) + b3, 0.0)
    adv = jnp.dot(bf(h), bf(wa), preferred_element_type=f32) + ba
    val = jnp.dot(bf(h), bf(wv), preferred_element_type=f32) + bv
    q_ref = val + adv - adv.mean(axis=1, keepdims=True)

    assert q.shape == (B, output_dim)
    assert jnp.allclose(q, q_ref, atol=2e-2, rtol=2e-2), (
        f"max abs err = {jnp.max(jnp.abs(q - q_ref))}")

    print("KERNEL_OK")
</pallas_src>

<mosaic_0001>
module attributes {stable_mosaic.version = 11 : i64} {
  func.func @qnetwork_kernel(%arg0: i32, %arg1: memref<8x1024xbf16, #tpu.memory_space<vmem>>, %arg2: memref<1024x128xbf16, #tpu.memory_space<vmem>>, %arg3: memref<1x128xf32, #tpu.memory_space<vmem>>, %arg4: memref<128x128xbf16, #tpu.memory_space<vmem>>, %arg5: memref<1x128xf32, #tpu.memory_space<vmem>>, %arg6: memref<128x128xbf16, #tpu.memory_space<vmem>>, %arg7: memref<1x128xf32, #tpu.memory_space<vmem>>, %arg8: memref<128x128xbf16, #tpu.memory_space<vmem>>, %arg9: memref<1x128xf32, #tpu.memory_space<vmem>>, %arg10: memref<8x128xf32, #tpu.memory_space<vmem>>) attributes {dimension_semantics = [#tpu.dimension_semantics<parallel>], iteration_bounds = array<i64: 1>, scalar_prefetch = 0 : i64, scratch_operands = 0 : i64, tpu.core_type = #tpu.core_type<tc>, window_params = [{transform_indices = @transform_0, window_bounds = array<i64: 8, 1024>}, {pipeline_mode = #tpu.pipeline_mode<synchronous>, transform_indices = @transform_1, window_bounds = array<i64: 1024, 128>}, {pipeline_mode = #tpu.pipeline_mode<synchronous>, transform_indices = @transform_2, window_bounds = array<i64: 1, 128>}, {pipeline_mode = #tpu.pipeline_mode<synchronous>, transform_indices = @transform_3, window_bounds = array<i64: 128, 128>}, {pipeline_mode = #tpu.pipeline_mode<synchronous>, transform_indices = @transform_4, window_bounds = array<i64: 1, 128>}, {pipeline_mode = #tpu.pipeline_mode<synchronous>, transform_indices = @transform_5, window_bounds = array<i64: 128, 128>}, {pipeline_mode = #tpu.pipeline_mode<synchronous>, transform_indices = @transform_6, window_bounds = array<i64: 1, 128>}, {pipeline_mode = #tpu.pipeline_mode<synchronous>, transform_indices = @transform_7, window_bounds = array<i64: 128, 128>}, {pipeline_mode = #tpu.pipeline_mode<synchronous>, transform_indices = @transform_8, window_bounds = array<i64: 1, 128>}, {transform_indices = @transform_9, window_bounds = array<i64: 8, 128>}]} {
    %c0 = arith.constant 0 : index
    %c0_0 = arith.constant 0 : index
    %0 = vector.load %arg1[%c0, %c0_0] : memref<8x1024xbf16, #tpu.memory_space<vmem>>, vector<8x1024xbf16>
    %c0_1 = arith.constant 0 : index
    %c0_2 = arith.constant 0 : index
    %1 = vector.load %arg2[%c0_1, %c0_2] : memref<1024x128xbf16, #tpu.memory_space<vmem>>, vector<1024x128xbf16>
    %cst = arith.constant dense<0.000000e+00> : vector<8x128xf32>
    %2 = tpu.matmul %0, %1, %cst {dimension_numbers = #tpu.dot_dimension_numbers<[1], [0], [0], [1], [0, 0, 1, 1], [], []>} : vector<8x1024xbf16>, vector<1024x128xbf16>, vector<8x128xf32> -> vector<8x128xf32>
    %c0_3 = arith.constant 0 : index
    %c0_4 = arith.constant 0 : index
    %3 = vector.load %arg3[%c0_3, %c0_4] : memref<1x128xf32, #tpu.memory_space<vmem>>, vector<1x128xf32>
    %4 = vector.broadcast %3 : vector<1x128xf32> to vector<8x128xf32>
    %5 = arith.addf %2, %4 : vector<8x128xf32>
    %cst_5 = arith.constant 0.000000e+00 : f32
    %6 = vector.broadcast %cst_5 : f32 to vector<8x128xf32>
    %7 = arith.maximumf %5, %6 : vector<8x128xf32>
    %8 = arith.truncf %7 : vector<8x128xf32> to vector<8x128xbf16>
    %c0_6 = arith.constant 0 : index
    %c0_7 = arith.constant 0 : index
    %9 = vector.load %arg4[%c0_6, %c0_7] : memref<128x128xbf16, #tpu.memory_space<vmem>>, vector<128x128xbf16>
    %cst_8 = arith.constant dense<0.000000e+00> : vector<8x128xf32>
    %10 = tpu.matmul %8, %9, %cst_8 {dimension_numbers = #tpu.dot_dimension_numbers<[1], [0], [0], [1], [0, 0, 1, 1], [], []>} : vector<8x128xbf16>, vector<128x128xbf16>, vector<8x128xf32> -> vector<8x128xf32>
    %c0_9 = arith.constant 0 : index
    %c0_10 = arith.constant 0 : index
    %11 = vector.load %arg5[%c0_9, %c0_10] : memref<1x128xf32, #tpu.memory_space<vmem>>, vector<1x128xf32>
    %12 = vector.broadcast %11 : vector<1x128xf32> to vector<8x128xf32>
    %13 = arith.addf %10, %12 : vector<8x128xf32>
    %cst_11 = arith.constant 0.000000e+00 : f32
    %14 = vector.broadcast %cst_11 : f32 to vector<8x128xf32>
    %15 = arith.maximumf %13, %14 : vector<8x128xf32>
    %16 = arith.truncf %15 : vector<8x128xf32> to vector<8x128xbf16>
    %c0_12 = arith.constant 0 : index
    %c0_13 = arith.constant 0 : index
    %17 = vector.load %arg6[%c0_12, %c0_13] : memref<128x128xbf16, #tpu.memory_space<vmem>>, vector<128x128xbf16>
    %cst_14 = arith.constant dense<0.000000e+00> : vector<8x128xf32>
    %18 = tpu.matmul %16, %17, %cst_14 {dimension_numbers = #tpu.dot_dimension_numbers<[1], [0], [0], [1], [0, 0, 1, 1], [], []>} : vector<8x128xbf16>, vector<128x128xbf16>, vector<8x128xf32> -> vector<8x128xf32>
    %c0_15 = arith.constant 0 : index
    %c0_16 = arith.constant 0 : index
    %19 = vector.load %arg7[%c0_15, %c0_16] : memref<1x128xf32, #tpu.memory_space<vmem>>, vector<1x128xf32>
    %20 = vector.broadcast %19 : vector<1x128xf32> to vector<8x128xf32>
    %21 = arith.addf %18, %20 : vector<8x128xf32>
    %cst_17 = arith.constant 0.000000e+00 : f32
    %22 = vector.broadcast %cst_17 : f32 to vector<8x128xf32>
    %23 = arith.maximumf %21, %22 : vector<8x128xf32>
    %24 = arith.truncf %23 : vector<8x128xf32> to vector<8x128xbf16>
    %c0_18 = arith.constant 0 : index
    %c0_19 = arith.constant 0 : index
    %25 = vector.load %arg8[%c0_18, %c0_19] : memref<128x128xbf16, #tpu.memory_space<vmem>>, vector<128x128xbf16>
    %cst_20 = arith.constant dense<0.000000e+00> : vector<8x128xf32>
    %26 = tpu.matmul %24, %25, %cst_20 {dimension_numbers = #tpu.dot_dimension_numbers<[1], [0], [0], [1], [0, 0, 1, 1], [], []>} : vector<8x128xbf16>, vector<128x128xbf16>, vector<8x128xf32> -> vector<8x128xf32>
    %c0_21 = arith.constant 0 : index
    %c0_22 = arith.constant 0 : index
    %27 = vector.load %arg9[%c0_21, %c0_22] : memref<1x128xf32, #tpu.memory_space<vmem>>, vector<1x128xf32>
    %28 = vector.broadcast %27 : vector<1x128xf32> to vector<8x128xf32>
    %29 = arith.addf %26, %28 : vector<8x128xf32>
    %c0_23 = arith.constant 0 : index
    %c0_24 = arith.constant 0 : index
    %30 = vector.load %arg10[%c0_23, %c0_24] : memref<8x128xf32, #tpu.memory_space<vmem>>, vector<8x128xf32>
    tpu.vector_store %arg10[%c0_23, %c0_24], %29 {strides = array<i32>} : memref<8x128xf32, #tpu.memory_space<vmem>>, vector<8x128xf32>,
    return
  }
  func.func @transform_0(%arg0: i32) -> (i32, i32) {
    %c0_i32 = arith.constant 0 : i32
    %c0_i32_0 = arith.constant 0 : i32
    return %arg0, %c0_i32 : i32, i32
  }
  func.func @transform_1(%arg0: i32) -> (i32, i32) {
    %c0_i32 = arith.constant 0 : i32
    %c0_i32_0 = arith.constant 0 : i32
    %c0_i32_1 = arith.constant 0 : i32
    return %c0_i32, %c0_i32_0 : i32, i32
  }
  func.func @transform_2(%arg0: i32) -> (i32, i32) {
    %c0_i32 = arith.constant 0 : i32
    %c0_i32_0 = arith.constant 0 : i32
    %c0_i32_1 = arith.constant 0 : i32
    return %c0_i32, %c0_i32_0 : i32, i32
  }
  func.func @transform_3(%arg0: i32) -> (i32, i32) {
    %c0_i32 = arith.constant 0 : i32
    %c0_i32_0 = arith.constant 0 : i32
    %c0_i32_1 = arith.constant 0 : i32
    return %c0_i32, %c0_i32_0 : i32, i32
  }
  func.func @transform_4(%arg0: i32) -> (i32, i32) {
    %c0_i32 = arith.constant 0 : i32
    %c0_i32_0 = arith.constant 0 : i32
    %c0_i32_1 = arith.constant 0 : i32
    return %c0_i32, %c0_i32_0 : i32, i32
  }
  func.func @transform_5(%arg0: i32) -> (i32, i32) {
    %c0_i32 = arith.constant 0 : i32
    %c0_i32_0 = arith.constant 0 : i32
    %c0_i32_1 = arith.constant 0 : i32
    return %c0_i32, %c0_i32_0 : i32, i32
  }
  func.func @transform_6(%arg0: i32) -> (i32, i32) {
    %c0_i32 = arith.constant 0 : i32
    %c0_i32_0 = arith.constant 0 : i32
    %c0_i32_1 = arith.constant 0 : i32
    return %c0_i32, %c0_i32_0 : i32, i32
  }
  func.func @transform_7(%arg0: i32) -> (i32, i32) {
    %c0_i32 = arith.constant 0 : i32
    %c0_i32_0 = arith.constant 0 : i32
    %c0_i32_1 = arith.constant 0 : i32
    return %c0_i32, %c0_i32_0 : i32, i32
  }
  func.func @transform_8(%arg0: i32) -> (i32, i32) {
    %c0_i32 = arith.constant 0 : i32
    %c0_i32_0 = arith.constant 0 : i32
    %c0_i32_1 = arith.constant 0 : i32
    return %c0_i32, %c0_i32_0 : i32, i32
  }
  func.func @transform_9(%arg0: i32) -> (i32, i32) {
    %c0_i32 = arith.constant 0 : i32
    %c0_i32_0 = arith.constant 0 : i32
    return %arg0, %c0_i32 : i32, i32
  }
}

</mosaic_0001>

<bundles_post_ra>
// kernel: tpu_custom_call.1
= control target key start
LH: loop header
LB: loop body
LE: loop exit
PB: predicated region body
PF: predicated region fallthrough
CT: control target
= control target key end

     0   :  { %14 = vsyncpa [#allocation3], 0  ;;  %s1809_s0 = inlined_call_operand.hbm [shape: bf16[8,1024], index: 0, kind: input, shape index: {}]   ;;  %s1810_s1 = inlined_call_operand.hbm [shape: bf16[1024,128], index: 1, kind: input, shape index: {}]   ;;  %s1811_s2 = inlined_call_operand.vmem [shape: f32[1,128], index: 2, kind: input, shape index: {}]   ;;  %s1812_s3 = inlined_call_operand.hbm [shape: bf16[128,128], index: 3, kind: input, shape index: {}]   ;;  %s1813_s4 = inlined_call_operand.vmem [shape: f32[1,128], index: 4, kind: input, shape index: {}]   ;;  %s1814_s5 = inlined_call_operand.hbm [shape: bf16[128,128], index: 5, kind: input, shape index: {}]   ;;  %s1815_s6 = inlined_call_operand.vmem [shape: f32[1,128], index: 6, kind: input, shape index: {}]   ;;  %s1816_s7 = inlined_call_operand.hbm [shape: bf16[128,128], index: 7, kind: input, shape index: {}]   ;;  %s1817_s8 = inlined_call_operand.vmem [shape: f32[1,128], index: 8, kind: input, shape index: {}]   ;;  %s1818_s9 = inlined_call_operand.hbm [shape: f32[8,128], index: 9, kind: output, shape index: {}]  }
   0x1   :  { %15 = vsyncpa [#allocation6], 0 }
   0x2   :  { %16 = vsyncpa [#allocation9], 0 }
   0x3   :  { %17 = vsyncpa [#allocation4], 0  ;;  %s1677_s30 = smov [#allocation5]  }
   0x4   :  { %s33_s10 = sshll.u32 %s1677_s30, 4  ;;  %s34_s10 = int_to_ptr.vmem [resolvable:$true] %s33_s10 }
   0x5   :  { %s1557_s11 = scalar_lea.vmem %s34_s10, 8192  ;;  %p1562_p1 = scmp.lt.s32.totalorder %s34_s10, %s34_s10 }
   0x6   :  { %p1558_p0 = scmp.ne.s32.totalorder %s34_s10, %s1557_s11  ;;  %p1563_p2 = scmp.lt.s32.totalorder %s1557_s11, %s1557_s11 }
   0x8   :  { %p1564_p3 = por %p1563_p2, %p1562_p1 }
   0xa   :  { %p1565_p4 = pnand %p1564_p3, %p1558_p0 }
   0xc   :  { %1568 = shalt.err (!%p1565_p4)
}
   0xd   :  { %s1678_s12 = smov 64   ;;  %s1679_s13 = smov 4  }
   0xe   :  { %39 = dma.hbm_to_vmem [thread:$0]  %s1810_s1, 8192, %s34_s10, [#allocation6], %s1678_s12, %s1678_s12, %s1679_s13  }
   0xf   :  { %s1680_s16 = smov [#allocation8]   ;;  %s1681_s18 = smov [#allocation2]  }
  0x10   :  { %s61_s17 = sshll.u32 %s1680_s16, 4  ;;  %s24_s19 = sshll.u32 %s1681_s18, 4  ;;  %s62_s17 = int_to_ptr.vmem [resolvable:$true] %s61_s17  ;;  %s25_s19 = int_to_ptr.vmem [resolvable:$true] %s24_s19 }
  0x11   :  { %s1577_s20 = scalar_lea.vmem %s62_s17, 1024  ;;  %p1582_p6 = scmp.lt.s32.totalorder %s62_s17, %s62_s17 }
  0x12   :  { %p1578_p5 = scmp.ne.s32.totalorder %s62_s17, %s1577_s20  ;;  %p1583_p7 = scmp.lt.s32.totalorder %s1577_s20, %s1577_s20 }
  0x14   :  { %p1584_p8 = por %p1583_p7, %p1582_p6 }
  0x16   :  { %p1585_p9 = pnand %p1584_p8, %p1578_p5 }
  0x18   :  { %1588 = shalt.err (!%p1585_p9)
}
  0x19   :  { %67 = dma.hbm_to_vmem [thread:$0]  %s1814_s5, 1024, %s62_s17, [#allocation9], %s1678_s12, %s1678_s12, %s1679_s13  }
  0x1a   :  { %s1597_s1 = scalar_lea.vmem %s25_s19, 512  ;;  %p1602_p11 = scmp.lt.s32.totalorder %s25_s19, %s25_s19 }
  0x1b   :  { %p1598_p10 = scmp.ne.s32.totalorder %s25_s19, %s1597_s1  ;;  %p1603_p12 = scmp.lt.s32.totalorder %s1597_s1, %s1597_s1 }
  0x1d   :  { %p1604_p13 = por %p1603_p12, %p1602_p11 }
  0x1f   :  { %p1605_p0 = pnand %p1604_p13, %p1598_p10 }
  0x21   :  { %1608 = shalt.err (!%p1605_p0)
}
  0x22   :  { %27 = dma.hbm_to_vmem [thread:$0]  %s1809_s0, 512, %s25_s19, [#allocation3]  }
  0x23   :  { %s1682_s25 = smov [#allocation7]   ;;  %s1683_s27 = smov [#allocation10]  }
  0x24   :  { %s47_s26 = sshll.u32 %s1682_s25, 4  ;;  %s75_s28 = sshll.u32 %s1683_s27, 4  ;;  %s48_s26 = int_to_ptr.vmem [resolvable:$true] %s47_s26  ;;  %s76_s28 = int_to_ptr.vmem [resolvable:$true] %s75_s28 }
  0x25   :  { %s1617_s29 = scalar_lea.vmem %s48_s26, 1024  ;;  %p1622_p2 = scmp.lt.s32.totalorder %s48_s26, %s48_s26 }
  0x26   :  { %p1618_p1 = scmp.ne.s32.totalorder %s48_s26, %s1617_s29  ;;  %p1623_p3 = scmp.lt.s32.totalorder %s1617_s29, %s1617_s29 }
  0x28   :  { %p1624_p4 = por %p1623_p3, %p1622_p2 }
  0x2a   :  { %p1625_p5 = pnand %p1624_p4, %p1618_p1 }
  0x2c   :  { %1628 = shalt.err (!%p1625_p5)
}
  0x2d   :  { %53 = dma.hbm_to_vmem [thread:$0]  %s1812_s3, 1024, %s48_s26, [#allocation6], %s1678_s12, %s1678_s12, %s1679_s13  }
  0x2e   :  { %s1637_s0 = scalar_lea.vmem %s76_s28, 1024  ;;  %p1642_p7 = scmp.lt.s32.totalorder %s76_s28, %s76_s28 }
  0x2f   :  { %p1638_p6 = scmp.ne.s32.totalorder %s76_s28, %s1637_s0  ;;  %p1643_p8 = scmp.lt.s32.totalorder %s1637_s0, %s1637_s0 }
  0x31   :  { %p1644_p9 = por %p1643_p8, %p1642_p7 }
  0x33   :  { %p1645_p10 = pnand %p1644_p9, %p1638_p6 }
  0x35   :  { %1648 = shalt.err (!%p1645_p10)
}
  0x36   :  { %81 = dma.hbm_to_vmem [thread:$0]  %s1816_s7, 1024, %s76_s28, [#allocation9], %s1678_s12, %s1678_s12, %s1679_s13  }
  0x37   :  { %1669 = dma.done.wait [#allocation3], 512  }
  0x38   :  { %1670 = vsyncadd [#allocation3], 4294966784 }
  0x39   :  { %1671 = dma.done.wait [#allocation6], 9216  }
  0x3a   :  { %1672 = vsyncadd [#allocation6], 4294958080 }
  0x3b   :  { %1673 = dma.done.wait [#allocation9], 2048  }
  0x3c   :  { %1674 = vsyncadd [#allocation9], 4294965248  ;;  %v1453_v0 = vld [vmem:[#allocation5 + $0x78] sm:$0xff]   ;;  %v1457_v4 = vld [vmem:[#allocation5 + $0x70] sm:$0xff]   ;;  %vm1685_vm0 = vmmov 0   ;;  %s1686_s16 = smov [#allocation11]  }
  0x3d   :  { %v1454_v1 = vld [vmem:[#allocation5 + $0xf8] sm:$0xff]   ;;  %1268 = vmatprep.subr.bf16.mxu0 %v1453_v0  ;;  %v1458_v5 = vld [vmem:[#allocation5 + $0xf0] sm:$0xff]   ;;  %v1461_v8 = vld [vmem:[#allocation5 + $0x68] sm:$0xff]   ;;  %s1157_s17 = sshll.u32 %s1686_s16, 4  ;;  %s1158_s17 = int_to_ptr.vmem [resolvable:$true] %s1157_s17 }
  0x3e   :  { %v1455_v2 = vld [vmem:[#allocation5 + $0x38] sm:$0xff]   ;;  %1290 = vmatprep.subr.bf16.mxu1 %v1454_v1  ;;  %v1459_v6 = vld [vmem:[#allocation5 + $0x30] sm:$0xff]   ;;  %v1462_v9 = vld [vmem:[#allocation5 + $0xe8] sm:$0xff]   ;;  %p1654_p12 = scmp.lt.s32.totalorder %s1158_s17, %s1158_s17 }
  0x3f   :  { %v1456_v3 = vld [vmem:[#allocation5 + $0xb8] sm:$0xff]   ;;  %1269 = vmatpush3.bf16.msra.mxu0 %v1455_v2  ;;  %v1460_v7 = vld [vmem:[#allocation5 + $0xb0] sm:$0xff]   ;;  %v1463_v10 = vld [vmem:[#allocation5 + $0x28] sm:$0xff]  }
  0x40   :  { %1291 = vmatpush3.bf16.msra.mxu1 %v1456_v3  ;;  %1270 = vmatprep.subr.bf16.mxu0 %v1457_v4  ;;  %v1464_v11 = vld [vmem:[#allocation5 + $0xa8] sm:$0xff]   ;;  %v1465_v12 = vld [vmem:[#allocation5 + $0x60] sm:$0xff]   ;;  %v1469_v16 = vld [vmem:[#allocation5 + $0x58] sm:$0xff]  }
  0x41   :  { %1292 = vmatprep.subr.bf16.mxu1 %v1458_v5  ;;  %v1466_v13 = vld [vmem:[#allocation5 + $0xe0] sm:$0xff]   ;;  %v1470_v17 = vld [vmem:[#allocation5 + $0xd8] sm:$0xff]   ;;  %v1473_v20 = vld [vmem:[#allocation5 + $0x50] sm:$0xff]  }
  0x42   :  { %v1467_v14 = vld [vmem:[#allocation5 + $0x20] sm:$0xff]   ;;  %v1471_v18 = vld [vmem:[#allocation5 + $0x18] sm:$0xff]   ;;  %v1474_v21 = vld [vmem:[#allocation5 + $0xd0] sm:$0xff]  }
  0x43   :  { %1271 = vmatpush3.bf16.msra.mxu0 %v1459_v6  ;;  %v1468_v15 = vld [vmem:[#allocation5 + $0xa0] sm:$0xff]   ;;  %v1472_v19 = vld [vmem:[#allocation5 + $0x98] sm:$0xff]   ;;  %v1475_v22 = vld [vmem:[#allocation5 + $0x10] sm:$0xff]  }
  0x44   :  { %1293 = vmatpush3.bf16.msra.mxu1 %v1460_v7  ;;  %1272 = vmatprep.subr.bf16.mxu0 %v1461_v8  ;;  %v1476_v23 = vld [vmem:[#allocation5 + $0x90] sm:$0xff]   ;;  %v1477_v24 = vld [vmem:[#allocation5 + $0x48] sm:$0xff]   ;;  %v1481_v28 = vld [vmem:[#allocation5 + $0x40] sm:$0xff]  }
  0x45   :  { %1294 = vmatprep.subr.bf16.mxu1 %v1462_v9  ;;  %v1478_v25 = vld [vmem:[#allocation5 + $0xc8] sm:$0xff]   ;;  %v1482_v29 = vld [vmem:[#allocation5 + $0xc0] sm:$0xff]   ;;  %v1489_v38 = vld [vmem:[#allocation5 + $0x178] sm:$0xff]  }
  0x46   :  { %v1479_v26 = vld [vmem:[#allocation5 + $0x8] sm:$0xff]   ;;  %v1483_v30 = vld [vmem:[#allocation5] sm:$0xff]   ;;  %v1490_v39 = vld [vmem:[#allocation5 + $0x1f8] sm:$0xff]  }
  0x47   :  { %1273 = vmatpush3.bf16.msra.mxu0 %v1463_v10  ;;  %v1480_v27 = vld [vmem:[#allocation5 + $0x88] sm:$0xff]   ;;  %v1484_v31 = vld [vmem:[#allocation5 + $0x80] sm:$0xff]   ;;  %v1491_v40 = vld [vmem:[#allocation5 + $0x138] sm:$0xff]  }
  0x48   :  { %1295 = vmatpush3.bf16.msra.mxu1 %v1464_v11  ;;  %1274 = vmatprep.subr.bf16.mxu0 %v1465_v12  ;;  %v100_v32 = vld [vmem:[#allocation2] sm:$0xff]  ;;  %v101_v33 = vld [vmem:[#allocation2 + $0x8] sm:$0xff]  ;;  %v1492_v41 = vld [vmem:[#allocation5 + $0x1b8] sm:$0xff]  }
  0x49   :  { %1296 = vmatprep.subr.bf16.mxu1 %v1466_v13  ;;  %v1169_v34 = vcombine.low %v100_v32, %v100_v32  ;;  %v1170_v35 = vcombine.high %v100_v32, %v100_v32  ;;  %v1171_v36 = vcombine.low %v101_v33, %v101_v33  ;;  %v1172_v37 = vcombine.high %v101_v33, %v101_v33  ;;  %v1493_v42 = vld [vmem:[#allocation5 + $0x170] sm:$0xff]   ;;  %v1497_v46 = vld [vmem:[#allocation5 + $0x168] sm:$0xff]   ;;  %v1501_v50 = vld [vmem:[#allocation5 + $0x160] sm:$0xff]  }
  0x4a   :  { %v1494_v43 = vld [vmem:[#allocation5 + $0x1f0] sm:$0xff]   ;;  %v1498_v47 = vld [vmem:[#allocation5 + $0x1e8] sm:$0xff]   ;;  %v1502_v51 = vld [vmem:[#allocation5 + $0x1e0] sm:$0xff]   ;;  %v1684_v13 = vmov 0.0  }
  0x4b   :  { %1275 = vmatpush3.bf16.msra.mxu0 %v1467_v14  ;;  %683 = vmatprep.mubr.bf16.mxu0 %v1170_v35  ;;  %v1495_v44 = vld [vmem:[#allocation5 + $0x130] sm:$0xff]   ;;  %v1499_v48 = vld [vmem:[#allocation5 + $0x128] sm:$0xff]   ;;  %v1503_v52 = vld [vmem:[#allocation5 + $0x120] sm:$0xff]  }
  0x4c   :  { %1297 = vmatpush3.bf16.msra.mxu1 %v1468_v15  ;;  %1276 = vmatprep.subr.bf16.mxu0 %v1469_v16  ;;  %v1496_v45 = vld [vmem:[#allocation5 + $0x1b0] sm:$0xff]   ;;  %v1500_v49 = vld [vmem:[#allocation5 + $0x1a8] sm:$0xff]   ;;  %v1504_v53 = vld [vmem:[#allocation5 + $0x1a0] sm:$0xff]  }
  0x4d   :  { %1298 = vmatprep.subr.bf16.mxu1 %v1470_v17  ;;  %723 = vmatprep.mubr.bf16.mxu1 %v1172_v37  ;;  %v1505_v54 = vld [vmem:[#allocation5 + $0x158] sm:$0xff]   ;;  %v1509_v58 = vld [vmem:[#allocation5 + $0x150] sm:$0xff]   ;;  %v1513_v62 = vld [vmem:[#allocation5 + $0x148] sm:$0xff]  }
  0x4e   :  { %v1506_v55 = vld [vmem:[#allocation5 + $0x1d8] sm:$0xff]   ;;  %v1510_v59 = vld [vmem:[#allocation5 + $0x1d0] sm:$0xff]   ;;  %v1514_v63 = vld [vmem:[#allocation5 + $0x1c8] sm:$0xff]  }
  0x4f   :  { %1277 = vmatpush3.bf16.msra.mxu0 %v1471_v18  ;;  %v1507_v56 = vld [vmem:[#allocation5 + $0x118] sm:$0xff]   ;;  %v1511_v60 = vld [vmem:[#allocation5 + $0x110] sm:$0xff]   ;;  %v1515_v0 = vld [vmem:[#allocation5 + $0x108] sm:$0xff]  }
  0x50   :  { %1299 = vmatpush3.bf16.msra.mxu1 %v1472_v19  ;;  %1278 = vmatprep.subr.bf16.mxu0 %v1473_v20  ;;  %v1508_v57 = vld [vmem:[#allocation5 + $0x198] sm:$0xff]   ;;  %v1512_v61 = vld [vmem:[#allocation5 + $0x190] sm:$0xff]   ;;  %v1516_v1 = vld [vmem:[#allocation5 + $0x188] sm:$0xff]  }
  0x51   :  { %1300 = vmatprep.subr.bf16.mxu1 %v1474_v21  ;;  %v1517_v2 = vld [vmem:[#allocation5 + $0x140] sm:$0xff]   ;;  %v102_v6 = vld [vmem:[#allocation2 + $0x10] sm:$0xff]  ;;  %v103_v9 = vld [vmem:[#allocation2 + $0x18] sm:$0xff] }
  0x52   :  { %v1518_v3 = vld [vmem:[#allocation5 + $0x1c0] sm:$0xff]   ;;  %v1173_v7 = vcombine.low %v102_v6, %v102_v6  ;;  %v1174_v8 = vcombine.high %v102_v6, %v102_v6  ;;  %v1175_v10 = vcombine.low %v103_v9, %v103_v9  ;;  %v1176_v11 = vcombine.high %v103_v9, %v103_v9  ;;  %v1525_v12 = vld [vmem:[#allocation7 + $0x38] sm:$0xff]   ;;  %v1526_v14 = vld [vmem:[#allocation7 + $0x30] sm:$0xff]  }
  0x53   :  { %1279 = vmatpush3.bf16.msra.mxu0 %v1475_v22  ;;  %v1519_v4 = vld [vmem:[#allocation5 + $0x100] sm:$0xff]   ;;  %v1527_v15 = vld [vmem:[#allocation7 + $0x28] sm:$0xff]   ;;  %v1529_v17 = vld [vmem:[#allocation7 + $0x18] sm:$0xff]  }
  0x54   :  { %1301 = vmatpush3.bf16.msra.mxu1 %v1476_v23  ;;  %1280 = vmatprep.subr.bf16.mxu0 %v1477_v24  ;;  %v1520_v5 = vld [vmem:[#allocation5 + $0x180] sm:$0xff]   ;;  %v1530_v18 = vld [vmem:[#allocation7 + $0x10] sm:$0xff]   ;;  %v1531_v19 = vld [vmem:[#allocation7 + $0x8] sm:$0xff]  }
  0x55   :  { %1302 = vmatprep.subr.bf16.mxu1 %v1478_v25  ;;  %v1528_v16 = vld [vmem:[#allocation7 + $0x20] sm:$0xff]   ;;  %v1533_v21 = vld [vmem:[#allocation8 + $0x38] sm:$0xff]   ;;  %v1534_v22 = vld [vmem:[#allocation8 + $0x30] sm:$0xff]  }
  0x56   :  { %v1532_v20 = vld [vmem:[#allocation7] sm:$0xff]   ;;  %v1535_v23 = vld [vmem:[#allocation8 + $0x28] sm:$0xff]   ;;  %v1537_v25 = vld [vmem:[#allocation8 + $0x18] sm:$0xff]  }
  0x57   :  { %1281 = vmatpush3.bf16.msra.mxu0 %v1479_v26  ;;  %v1536_v24 = vld [vmem:[#allocation8 + $0x20] sm:$0xff]   ;;  %v1538_v26 = vld [vmem:[#allocation8 + $0x10] sm:$0xff]   ;;  %v1547_v6 = vld [vmem:[#allocation10 + $0x8] sm:$0xff]  }
  0x58   :  { %1303 = vmatpush3.bf16.msra.mxu1 %v1480_v27  ;;  %1282 = vmatprep.subr.bf16.mxu0 %v1481_v28 }
  0x59   :  { %1304 = vmatprep.subr.bf16.mxu1 %v1482_v29 }
  0x5b   :  { %1283 = vmatpush3.bf16.msra.mxu0 %v1483_v30 }
  0x5c   :  { %1305 = vmatpush3.bf16.msra.mxu1 %v1484_v31  ;;  %1312 = vmatprep.subr.bf16.mxu0 %v1489_v38 }
  0x5d   :  { %1334 = vmatprep.subr.bf16.mxu1 %v1490_v39 }
  0x5e   :  { %684 = vmatmul.mubr.bf16.vlgmr.msra.gmra.mxu0 %v1169_v34 }
  0x5f   :  { %724 = vmatmul.mubr.bf16.vlgmr.msra.gmra.mxu1 %v1171_v36  ;;  %1313 = vmatpush3.bf16.msra.mxu0 %v1491_v40  ;;  %v1168_v36 = vld [vmem:[%s1811_s2] ss:$0 sm:$0xff] }
  0x60   :  { %1335 = vmatpush3.bf16.msra.mxu1 %v1492_v41  ;;  %1314 = vmatprep.subr.bf16.mxu0 %v1493_v42 }
  0x61   :  { %1336 = vmatprep.subr.bf16.mxu1 %v1494_v43  ;;  %763 = vmatprep.mubr.bf16.mxu0 %v1174_v8  ;;  %v1250_v8 = vld [vmem:[%s1815_s6] ss:$0 sm:$0xff]  ;;  %s1649_s6 = scalar_lea.vmem %s1158_s17, 128 }
  0x62   :  { %803 = vmatprep.mubr.bf16.mxu1 %v1176_v11  ;;  %p1650_p11 = scmp.ne.s32.totalorder %s1158_s17, %s1649_s6  ;;  %p1655_p13 = scmp.lt.s32.totalorder %s1649_s6, %s1649_s6 }
  0x63   :  { %1315 = vmatpush3.bf16.msra.mxu0 %v1495_v44 }
  0x64   :  { %1337 = vmatpush3.bf16.msra.mxu1 %v1496_v45  ;;  %1316 = vmatprep.subr.bf16.mxu0 %v1497_v46  ;;  %p1656_p0 = por %p1655_p13, %p1654_p12 }
  0x65   :  { %1338 = vmatprep.subr.bf16.mxu1 %v1498_v47 }
  0x66   :  { %p1657_p1 = pnand %p1656_p0, %p1650_p11 }
  0x67   :  { %1317 = vmatpush3.bf16.msra.mxu0 %v1499_v48 }
  0x68   :  { %1339 = vmatpush3.bf16.msra.mxu1 %v1500_v49  ;;  %1318 = vmatprep.subr.bf16.mxu0 %v1501_v50 }
  0x69   :  { %1340 = vmatprep.subr.bf16.mxu1 %v1502_v51 }
  0x6b   :  { %1319 = vmatpush3.bf16.msra.mxu0 %v1503_v52 }
  0x6c   :  { %1341 = vmatpush3.bf16.msra.mxu1 %v1504_v53  ;;  %1320 = vmatprep.subr.bf16.mxu0 %v1505_v54  ;;  %v1539_v54 = vld [vmem:[#allocation8 + $0x8] sm:$0xff]  }
  0x6d   :  { %1342 = vmatprep.subr.bf16.mxu1 %v1506_v55  ;;  %v1540_v55 = vld [vmem:[#allocation8] sm:$0xff]  }
  0x6f   :  { %1321 = vmatpush3.bf16.msra.mxu0 %v1507_v56  ;;  %v1541_v56 = vld [vmem:[#allocation10 + $0x38] sm:$0xff]  }
  0x70   :  { %1343 = vmatpush3.bf16.msra.mxu1 %v1508_v57  ;;  %1322 = vmatprep.subr.bf16.mxu0 %v1509_v58  ;;  %v1542_v57 = vld [vmem:[#allocation10 + $0x30] sm:$0xff]   ;;  %v1543_v58 = vld [vmem:[#allocation10 + $0x28] sm:$0xff]  }
  0x71   :  { %1344 = vmatprep.subr.bf16.mxu1 %v1510_v59  ;;  %v1544_v59 = vld [vmem:[#allocation10 + $0x20] sm:$0xff]  }
  0x73   :  { %1323 = vmatpush3.bf16.msra.mxu0 %v1511_v60  ;;  %v1545_v60 = vld [vmem:[#allocation10 + $0x18] sm:$0xff]  }
  0x74   :  { %1345 = vmatpush3.bf16.msra.mxu1 %v1512_v61  ;;  %1324 = vmatprep.subr.bf16.mxu0 %v1513_v62  ;;  %v1546_v61 = vld [vmem:[#allocation10 + $0x10] sm:$0xff]   ;;  %v1241_v62 = vld [vmem:[%s1813_s4] ss:$0 sm:$0xff] }
  0x75   :  { %1346 = vmatprep.subr.bf16.mxu1 %v1514_v63 }
  0x77   :  { %1325 = vmatpush3.bf16.msra.mxu0 %v1515_v0 }
  0x78   :  { %1347 = vmatpush3.bf16.msra.mxu1 %v1516_v1  ;;  %1326 = vmatprep.subr.bf16.mxu0 %v1517_v2 }
  0x79   :  { %1348 = vmatprep.subr.bf16.mxu1 %v1518_v3 }
  0x7b   :  { %1327 = vmatpush3.bf16.msra.mxu0 %v1519_v4 }
  0x7c   :  { %1349 = vmatpush3.bf16.msra.mxu1 %v1520_v5  ;;  %1383 = vmatprep.subr.bf16.mxu0 %v1684_v13 }
  0x7d   :  { %1403 = vmatprep.subr.bf16.mxu1 %v1684_v13 }
  0x7e   :  { %764 = vmatmul.mubr.bf16.vlgmr.msra.gmra.mxu0 %v1173_v7  ;;  %v1548_v7 = vld [vmem:[#allocation10] sm:$0xff]  }
  0x7f   :  { %804 = vmatmul.mubr.bf16.vlgmr.msra.gmra.mxu1 %v1175_v10  ;;  %1384 = vmatpush3.bf16.msra.mxu0 %v1525_v12 }
  0x80   :  { %1385 = vmatprep.subr.bf16.mxu0 %v1684_v13  ;;  %1399 = vmatprep.mubr.msk.bf16.mxu0 %vm1685_vm0, %v1684_v13 }
  0x81   :  { %1419 = vmatprep.mubr.msk.bf16.mxu1 %vm1685_vm0, %v1684_v13  ;;  %1404 = vmatpush3.bf16.msra.mxu1 %v1533_v21 }
  0x82   :  { %1405 = vmatprep.subr.bf16.mxu1 %v1684_v13 }
  0x83   :  { %1386 = vmatpush3.bf16.msra.mxu0 %v1526_v14 }
  0x84   :  { %1387 = vmatprep.subr.bf16.mxu0 %v1684_v13 }
  0x85   :  { %1406 = vmatpush3.bf16.msra.mxu1 %v1534_v22 }
  0x86   :  { %1407 = vmatprep.subr.bf16.mxu1 %v1684_v13 }
  0x87   :  { %1388 = vmatpush3.bf16.msra.mxu0 %v1527_v15 }
  0x88   :  { %1389 = vmatprep.subr.bf16.mxu0 %v1684_v13 }
  0x89   :  { %1408 = vmatpush3.bf16.msra.mxu1 %v1535_v23 }
  0x8a   :  { %1409 = vmatprep.subr.bf16.mxu1 %v1684_v13 }
  0x8b   :  { %1390 = vmatpush3.bf16.msra.mxu0 %v1528_v16 }
  0x8c   :  { %1391 = vmatprep.subr.bf16.mxu0 %v1684_v13 }
  0x8d   :  { %1410 = vmatpush3.bf16.msra.mxu1 %v1536_v24 }
  0x8e   :  { %1411 = vmatprep.subr.bf16.mxu1 %v1684_v13 }
  0x8f   :  { %1392 = vmatpush3.bf16.msra.mxu0 %v1529_v17  ;;  %v1259_v17 = vld [vmem:[%s1817_s8] ss:$0 sm:$0xff] }
  0x90   :  { %1393 = vmatprep.subr.bf16.mxu0 %v1684_v13 }
  0x91   :  { %1412 = vmatpush3.bf16.msra.mxu1 %v1537_v25 }
  0x92   :  { %1413 = vmatprep.subr.bf16.mxu1 %v1684_v13 }
  0x93   :  { %1394 = vmatpush3.bf16.msra.mxu0 %v1530_v18 }
  0x94   :  { %1395 = vmatprep.subr.bf16.mxu0 %v1684_v13 }
  0x95   :  { %1414 = vmatpush3.bf16.msra.mxu1 %v1538_v26 }
  0x96   :  { %1415 = vmatprep.subr.bf16.mxu1 %v1684_v13 }
  0x97   :  { %1396 = vmatpush3.bf16.msra.mxu0 %v1531_v19 }
  0x98   :  { %1397 = vmatprep.subr.bf16.mxu0 %v1684_v13 }
  0x99   :  { %1416 = vmatpush3.bf16.msra.mxu1 %v1539_v54 }
  0x9a   :  { %1417 = vmatprep.subr.bf16.mxu1 %v1684_v13 }
  0x9b   :  { %1398 = vmatpush3.bf16.msra.mxu0 %v1532_v20 }
  0x9c   :  { %1423 = vmatprep.subr.bf16.mxu0 %v1684_v13 }
  0x9d   :  { %1418 = vmatpush3.bf16.msra.mxu1 %v1540_v55 }
 0x11e   :  { %v1284_v27 = vpop.f32.mrf.mxu0 }
 0x11f   :  { %v1306_v28 = vpop.f32.mrf.mxu1 }
 0x120   :  { %v1285_v29 = vpop.f32.mrf.mxu0 }
 0x121   :  { %v1307_v30 = vpop.f32.mrf.mxu1  ;;  %v1286_v35 = vadd.f32 %v1285_v29, %v1284_v27 }
 0x122   :  { %v1287_v31 = vpop.f32.mrf.mxu0  ;;  %v1308_v38 = vadd.f32 %v1307_v30, %v1306_v28 }
 0x123   :  { %v1309_v32 = vpop.f32.mrf.mxu1  ;;  %v686_v37 = vadd.f32 %v1286_v35, %v1168_v36 }
 0x124   :  { %v1288_v33 = vpop.f32.mrf.mxu0 }
 0x125   :  { %v1310_v34 = vpop.f32.mrf.mxu1  ;;  %v726_v43 = vadd.f32 %v1308_v38, %v686_v37 }
 0x13e   :  { %v1328_v39 = vpop.f32.mrf.mxu0 }
 0x13f   :  { %v1350_v40 = vpop.f32.mrf.mxu1 }
 0x140   :  { %v1329_v41 = vpop.f32.mrf.mxu0 }
 0x141   :  { %v1351_v42 = vpop.f32.mrf.mxu1  ;;  %v1330_v44 = vadd.f32 %v1329_v41, %v1328_v39 }
 0x142   :  { %v1331_v45 = vpop.f32.mrf.mxu0  ;;  %v1352_v48 = vadd.f32 %v1351_v42, %v1350_v40 }
 0x143   :  { %v1353_v46 = vpop.f32.mrf.mxu1  ;;  %v766_v47 = vadd.f32 %v1330_v44, %v726_v43 }
 0x144   :  { %v1332_v49 = vpop.f32.mrf.mxu0 }
 0x145   :  { %v1354_v50 = vpop.f32.mrf.mxu1  ;;  %v806_v51 = vadd.f32 %v1352_v48, %v766_v47 }
 0x147   :  { %v811_v52 = vmax.f32 %v806_v51, 0.0 }
 0x149   :  { %v812_v53 = vpack.c.bf16 %v811_v52, %v811_v52 }
 0x14b   :  { %1400 = vmatmul.mubr.bf16.vlgmr.msra.gmra.mxu0 %v812_v53 }
 0x14c   :  { %1439 = vmatprep.mubr.msk.bf16.mxu0 %vm1685_vm0, %v1684_v13  ;;  %1424 = vmatpush3.bf16.msra.mxu0 %v1541_v56 }
 0x14d   :  { %1425 = vmatprep.subr.bf16.mxu0 %v1684_v13 }
 0x150   :  { %1426 = vmatpush3.bf16.msra.mxu0 %v1542_v57 }
 0x151   :  { %1427 = vmatprep.subr.bf16.mxu0 %v1684_v13 }
 0x154   :  { %1428 = vmatpush3.bf16.msra.mxu0 %v1543_v58 }
 0x155   :  { %1429 = vmatprep.subr.bf16.mxu0 %v1684_v13 }
 0x158   :  { %1430 = vmatpush3.bf16.msra.mxu0 %v1544_v59 }
 0x159   :  { %1431 = vmatprep.subr.bf16.mxu0 %v1684_v13 }
 0x15c   :  { %1432 = vmatpush3.bf16.msra.mxu0 %v1545_v60 }
 0x15d   :  { %1433 = vmatprep.subr.bf16.mxu0 %v1684_v13 }
 0x160   :  { %1434 = vmatpush3.bf16.msra.mxu0 %v1546_v61 }
 0x161   :  { %1435 = vmatprep.subr.bf16.mxu0 %v1684_v13 }
 0x164   :  { %1436 = vmatpush3.bf16.msra.mxu0 %v1547_v6 }
 0x165   :  { %1437 = vmatprep.subr.bf16.mxu0 %v1684_v13 }
 0x168   :  { %1438 = vmatpush3.bf16.msra.mxu0 %v1548_v7 }
 0x20b   :  { %v918_v63 = vpop.f32.mrf.mxu0 }
 0x20c   :  { %v919_v0 = vadd.f32 %v1241_v62, %v918_v63 }
 0x20d   :  { %v1401_v1 = vpop.f32.mrf.mxu0 }
 0x20e   :  { %v924_v2 = vmax.f32 %v919_v0, 0.0 }
 0x20f   :  { %v921_v3 = vpop.f32.mrf.mxu0 }
 0x210   :  { %v925_v4 = vpack.c.bf16 %v924_v2, %v924_v2 }
 0x211   :  { %v1402_v5 = vpop.f32.mrf.mxu0 }
 0x212   :  { %1420 = vmatmul.mubr.bf16.vlgmr.msra.gmra.mxu1 %v925_v4 }
 0x2d2   :  { %v1031_v9 = vpop.f32.mrf.mxu1 }
 0x2d3   :  { %v1032_v10 = vadd.f32 %v1250_v8, %v1031_v9 }
 0x2d4   :  { %v1421_v11 = vpop.f32.mrf.mxu1 }
 0x2d5   :  { %v1037_v12 = vmax.f32 %v1032_v10, 0.0 }
 0x2d6   :  { %v1034_v14 = vpop.f32.mrf.mxu1 }
 0x2d7   :  { %v1038_v15 = vpack.c.bf16 %v1037_v12, %v1037_v12 }
 0x2d8   :  { %v1422_v16 = vpop.f32.mrf.mxu1 }
 0x2d9   :  { %1440 = vmatmul.mubr.bf16.vlgmr.msra.gmra.mxu0 %v1038_v15 }
 0x399   :  { %v1144_v13 = vpop.f32.mrf.mxu0 }
 0x39a   :  { %v1145_v18 = vadd.f32 %v1259_v17, %v1144_v13 }
 0x39b   :  { %v1441_v19 = vpop.f32.mrf.mxu0 }
 0x39c   :  { %1150 = vst [vmem:[#allocation11] sm:$0xff] %v1145_v18 }
 0x39d   :  { %v1147_v20 = vpop.f32.mrf.mxu0 }
 0x39e   :  { %1660 = shalt.err (!%p1657_p1)
}
 0x39f   :  { %1160 = dma.vmem_to_hbm [thread:$0]  %s1158_s17, 128, %s1818_s9, [#allocation4]   ;;  %v1442_v21 = vpop.f32.mrf.mxu0 }
 0x3a0   :  { %1675 = dma.done.wait [#allocation4], 128  }
 0x3a1   :  { %1676 = vsyncadd [#allocation4], 4294967168 }
 0x3a2   :  { %1164 = vsyncpa [#allocation3], 1 }
 0x3a3   :  { %1165 = vsyncpa [#allocation6], 1 }
 0x3a4   :  { %1166 = vsyncpa [#allocation9], 1 }
 0x3a5   :  { %1167 = vsyncpa [#allocation4], 1 }

</bundles_post_ra>
